<compile_context>
chip_gen: v5e
topology: v5e:2x2
jax: 0.10.0
libtpu: 0.0.40
codegen_flags: <defaults>
</compile_context>

<pallas_src>
import functools

import jax
import jax.numpy as jnp
from jax import lax
from jax.experimental import pallas as pl
from jax.experimental.pallas import tpu as pltpu

_LANE = 128  # TPU vreg lane width


def _awl_kernel(n, l_ref, p_ref, out_ref):
    # l_ref: (1, n_pad) f32 losses in VMEM, lanes >= n filled with 0.0
    # p_ref: (1, n_pad) f32 params in VMEM, lanes >= n filled with 1.0
    l = l_ref[...]
    p = p_ref[...]
    p2 = p * p

    # Explicit lane mask: keeps the reciprocal/log inputs well-defined and
    # removes the padded lanes from the reduction regardless of how the
    # compiler lowers the masked reduce (one free VPU select each).
    lane = lax.broadcasted_iota(jnp.int32, p2.shape, 1)
    valid = lane < n
    p2_safe = jnp.where(valid, p2, 1.0)

    # 0.5 * l / p^2  (exact reciprocal so the tight reference check holds)
    weighted = 0.5 * l * pl.reciprocal(p2_safe, approx=False)
    term = weighted + jnp.log(1.0 + p2_safe)
    term = jnp.where(valid, term, 0.0)

    out_ref[0, 0] = jnp.sum(term)


def auto_weight_loss(losses, params):
    """losses: (loss_num,) f32 scalar losses; params: (loss_num,) f32.

    Returns a scalar f32 equal to PyTorch AutoWeightLoss.forward(*losses).
    """
    losses = jnp.asarray(losses, jnp.float32).reshape(-1)
    params = jnp.asarray(params, jnp.float32).reshape(-1)
    n = losses.shape[0]
    n_pad = max(_LANE, ((n + _LANE - 1) // _LANE) * _LANE)

    # Lane-pad with safe fill values so every lane the kernel touches is
    # defined: losses -> 0.0, params -> 1.0 (the kernel masks the pad terms
    # out of the sum, so the fill never contributes).
    l_pad = jnp.zeros((1, n_pad), jnp.float32).at[0, :n].set(losses)
    p_pad = jnp.ones((1, n_pad), jnp.float32).at[0, :n].set(params)

    cost = pl.CostEstimate(
        flops=8 * n_pad,
        transcendentals=2 * n_pad,            # reciprocal + log per element
        bytes_accessed=(2 * n_pad + 1) * 4,
    )

    out = pl.pallas_call(
        functools.partial(_awl_kernel, n),
        out_shape=jax.ShapeDtypeStruct((1, 1), jnp.float32),
        in_specs=[pl.BlockSpec(memory_space=pltpu.VMEM),   # (1, n_pad) losses
                  pl.BlockSpec(memory_space=pltpu.VMEM)],  # (1, n_pad) params
        out_specs=pl.BlockSpec(memory_space=pltpu.SMEM),   # scalar result
        cost_estimate=cost,
    )(l_pad, p_pad)
    return out[0, 0]


if __name__ == "__main__":
    loss_num = 4
    key = jax.random.PRNGKey(0)

    # params initialized to ones, exactly like torch.ones(loss_num) in __init__.
    params = jnp.ones((loss_num,), jnp.float32)

    # Synthetic scalar losses (e.g. outputs of several task losses).
    losses = jax.random.uniform(key, (loss_num,), jnp.float32,
                                minval=0.1, maxval=2.0)

    result = auto_weight_loss(losses, params)
    result = jax.block_until_ready(result)

    # Reference check in plain JAX (mirrors the PyTorch loop).
    ref = jnp.sum(0.5 / params**2 * losses + jnp.log(1.0 + params**2))
    assert jnp.allclose(result, ref, rtol=1e-5, atol=1e-5), (result, ref)

    print("KERNEL_OK")
</pallas_src>

<mosaic_0001>
module attributes {stable_mosaic.version = 11 : i64} {
  func.func @_awl_kernel(%arg0: memref<1x128xf32, #tpu.memory_space<vmem>>, %arg1: memref<1x128xf32, #tpu.memory_space<vmem>>, %arg2: memref<1x1xf32, #tpu.memory_space<smem>>) attributes {dimension_semantics = [], scalar_prefetch = 0 : i64, scratch_operands = 0 : i64, tpu.core_type = #tpu.core_type<tc>} {
    %c0 = arith.constant 0 : index
    %c0_0 = arith.constant 0 : index
    %0 = vector.load %arg0[%c0, %c0_0] : memref<1x128xf32, #tpu.memory_space<vmem>>, vector<1x128xf32>
    %c0_1 = arith.constant 0 : index
    %c0_2 = arith.constant 0 : index
    %1 = vector.load %arg1[%c0_1, %c0_2] : memref<1x128xf32, #tpu.memory_space<vmem>>, vector<1x128xf32>
    %2 = arith.mulf %1, %1 : vector<1x128xf32>
    %3 = tpu.iota {dimensions = array<i32: 1>} : vector<1x128xi32>
    %c4_i32 = arith.constant 4 : i32
    %4 = vector.broadcast %c4_i32 : i32 to vector<1x128xi32>
    %5 = arith.cmpi slt, %3, %4 : vector<1x128xi32>
    %cst = arith.constant 1.000000e+00 : f32
    %6 = vector.broadcast %cst : f32 to vector<1x128xf32>
    %7 = arith.select %5, %2, %6 : vector<1x128xi1>, vector<1x128xf32>
    %cst_3 = arith.constant 5.000000e-01 : f32
    %8 = vector.broadcast %cst_3 : f32 to vector<1x128xf32>
    %9 = arith.mulf %8, %0 : vector<1x128xf32>
    %10 = tpu.reciprocal %7 : vector<1x128xf32> -> vector<1x128xf32>
    %11 = arith.mulf %9, %10 : vector<1x128xf32>
    %cst_4 = arith.constant 1.000000e+00 : f32
    %12 = vector.broadcast %cst_4 : f32 to vector<1x128xf32>
    %13 = arith.addf %12, %7 : vector<1x128xf32>
    %14 = math.log %13 : vector<1x128xf32>
    %15 = arith.addf %11, %14 : vector<1x128xf32>
    %cst_5 = arith.constant 0.000000e+00 : f32
    %16 = vector.broadcast %cst_5 : f32 to vector<1x128xf32>
    %17 = arith.select %5, %15, %16 : vector<1x128xi1>, vector<1x128xf32>
    %18 = vector.shape_cast %17 : vector<1x128xf32> to vector<1x1x128xf32>
    %cst_6 = arith.constant dense<0.000000e+00> : vector<1xf32>
    %19 = vector.multi_reduction <add>, %18, %cst_6 [1, 2] : vector<1x1x128xf32> to vector<1xf32>
    %20 = vector.shape_cast %19 : vector<1xf32> to vector<1x1x1xf32>
    %21 = vector.extract %20[0, 0, 0] : f32 from vector<1x1x1xf32>
    %c0_7 = arith.constant 0 : index
    %c0_8 = arith.constant 0 : index
    %22 = memref.load %arg2[%c0_7, %c0_8] : memref<1x1xf32, #tpu.memory_space<smem>>
    memref.store %21, %arg2[%c0_7, %c0_8] : memref<1x1xf32, #tpu.memory_space<smem>>
    return
  }
}

</mosaic_0001>

<bundles_post_ra>
// kernel: tpu_custom_call.1
= control target key start
LH: loop header
LB: loop body
LE: loop exit
PB: predicated region body
PF: predicated region fallthrough
CT: control target
= control target key end

     0   :  { %7 = vsyncpa [#allocation3], 0  ;;  %s202_s0 = inlined_call_operand.hbm [shape: f32[1,128], index: 0, kind: input, shape index: {}]   ;;  %s203_s1 = inlined_call_operand.hbm [shape: f32[1,128], index: 1, kind: input, shape index: {}]   ;;  %s204_s2 = inlined_call_operand.hbm [shape: f32[1,1], index: 2, kind: output, shape index: {}]  }
   0x1   :  { %8 = vsyncpa [#allocation6], 0 }
   0x2   :  { %9 = vsyncpa [#allocation4], 0  ;;  %s15_s11 = sshll.u32 %s202_s0, 4  ;;  %s173_s12 = smov [#allocation2]   ;;  %s16_s11 = int_to_ptr.hbm [resolvable:$true] %s15_s11 }
   0x3   :  { %s17_s13 = sshll.u32 %s173_s12, 4  ;;  %s26_s16 = sshll.u32 %s203_s1, 4  ;;  %s18_s13 = int_to_ptr.vmem [resolvable:$true] %s17_s13  ;;  %s27_s16 = int_to_ptr.hbm [resolvable:$true] %s26_s16 }
   0x4   :  { %20 = dma.hbm_to_vmem [thread:$0]  %s16_s11, 16, %s18_s13, [#allocation3]  }
   0x5   :  { %s174_s17 = smov [#allocation5]  }
   0x6   :  { %s28_s18 = sshll.u32 %s174_s17, 4  ;;  %s29_s18 = int_to_ptr.vmem [resolvable:$true] %s28_s18 }
   0x7   :  { %31 = dma.hbm_to_vmem [thread:$0]  %s27_s16, 16, %s29_s18, [#allocation6]  }
   0x8   :  { %167 = dma.done.wait [#allocation3], 16  }
   0x9   :  { %168 = vsyncadd [#allocation3], 4294967280 }
   0xa   :  { %169 = dma.done.wait [#allocation6], 16  }
   0xb   :  { %170 = vsyncadd [#allocation6], 4294967280  ;;  %v43_v0 = vlaneseq  ;;  %v41_v2 = vld [vmem:[#allocation5] sm:$0x1]  ;;  %v40_v11 = vld [vmem:[#allocation2] sm:$0x1] }
   0xc   :  { %v42_v3 = vmul.f32 %v41_v2, %v41_v2  ;;  %v47_v15 = vmul.f32 0.5, %v40_v11  ;;  %vm68_vm5 = vcmask 1040384   ;;  %s86_s19 = sshll.u32 %s204_s2, 4  ;;  %s175_s21 = smov [#allocation7]   ;;  %s87_s19 = int_to_ptr.hbm [resolvable:$true] %s86_s19 }
   0xd   :  { %v44_v1 = vand.u32 127, %v43_v0 }
   0xf   :  { %vm45_vm0 = vcmp.lt.s32.totalorder %v44_v1, 4 }
  0x10   :  { %v46_v4 = vsel %vm45_vm0, %v42_v3, 1.0 }
  0x11   :  { %103 = vrcp.f32 %v46_v4  ;;  %v63_v5 = vadd.f32 1.0, %v46_v4  ;;  %v59_v8 = vand.u32 2147483648, %v46_v4  ;;  %vm53_vm1 = vweird.f32 %v46_v4 }
  0x12   :  { %v57_v10 = vand.u32 2147483647, %v46_v4 }
  0x13   :  { %105 = vlog2.f32 %v63_v5  ;;  %v60_v14 = vor.u32 1.1754944e-38, %v59_v8 }
  0x14   :  { %vm58_vm4 = vcmp.eq.f32.partialorder %v57_v10, 8.507059e+37 }
  0x17   :  { %v104_v6 = vpop.eup %103 }
  0x18   :  { %v49_v7 = vmul.f32 %v104_v6, %v46_v4  ;;  %vm54_vm2 = vweird.f32 %v104_v6 }
  0x19   :  { %v106_v13 = vpop.eup %105  ;;  %vm55_vm3 = vmor %vm53_vm1, %vm54_vm2 }
  0x1a   :  { %v50_v9 = vsub.f32 1.0, %v49_v7  ;;  %v65_v18 = vmul.f32 0.6931472, %v106_v13 }
  0x1c   :  { %v51_v12 = vmul.f32 %v104_v6, %v50_v9 }
  0x1e   :  { %v52_v16 = vadd.f32 %v104_v6, %v51_v12 }
  0x20   :  { %v56_v17 = vsel %vm55_vm3, %v104_v6, %v52_v16 }
  0x21   :  { %v61_v19 = vsel %vm58_vm4, %v60_v14, %v56_v17 }
  0x22   :  { %v62_v20 = vmul.f32 %v61_v19, %v47_v15 }
  0x24   :  { %v66_v21 = vadd.f32 %v65_v18, %v62_v20 }
  0x26   :  { %v67_v22 = vsel %vm45_vm0, %v66_v21, 0.0 }
  0x27   :  { %v69_v23 = vsel %vm68_vm5, %v67_v22, 0.0 }
  0x28   :  { %70 = vadd.xlane.f32.xlu0 %v69_v23 }
  0x9b   :  { %v71_v24 = vpop.xlane.xlu0 %70 }
  0x9c   :  { %v72_v25 = vrot.slane %v71_v24, 4 }
  0x9e   :  { %v73_v26 = vadd.f32 %v72_v25, %v71_v24 }
  0xa0   :  { %v74_v27 = vrot.slane %v73_v26, 2 }
  0xa2   :  { %v75_v28 = vadd.f32 %v74_v27, %v73_v26 }
  0xa4   :  { %v76_v29 = vrot.slane %v75_v28, 1 }
  0xa6   :  { %v77_v30 = vadd.f32 %v76_v29, %v75_v28 }
  0xa8   :  { %98 = vpush %v77_v30 }
  0xd9   :  { %s99_s20 = spop %98 }
  0xda   :  { %80 = sst [smem:[#allocation7]] %s99_s20 }
  0xdb   :  { %89 = dma.smem_to_hbm %s175_s21, 16, %s87_s19, [#allocation4]  }
  0xdc   :  { %171 = dma.done.wait [#allocation4], 16  }
  0xdd   :  { %172 = vsyncadd [#allocation4], 4294967280 }
  0xde   :  { %94 = sfence }
  0xdf   :  { %95 = vsyncpa [#allocation3], 1 }
  0xe0   :  { %96 = vsyncpa [#allocation6], 1 }
  0xe1   :  { %97 = vsyncpa [#allocation4], 1 }

</bundles_post_ra>
